<compile_context>
chip_gen: v7x
topology: tpu7x:2x2x1
jax: 0.10.0
libtpu: 0.0.40
codegen_flags: <defaults>
</compile_context>

<pallas_src>
import jax
import jax.numpy as jnp
from jax import lax
from jax.experimental import pallas as pl
from jax.experimental.pallas import tpu as pltpu


_CHUNK = 256  # samples processed per inner-loop step; bounds vreg pressure
              # ((CHUNK, 4) f32 chunk = 32 vregs; (16, CHUNK) hidden = 4 vregs)


def _round_up(n, m):
    return pl.cdiv(n, m) * m


def dqn_kernel(x_ref, w1_ref, b1_ref, w2_ref, b2_ref, o_ref):
    """x_ref: (bt, 4) natural batch-major layout.
    w1: (16, 4), b1: (16, 1), w2: (2, 16), b2: (2, 1) -- VMEM-resident.
    o_ref: (2, bt) lane-dense (batch on the 128-lane axis)."""
    w1 = w1_ref[...]
    b1 = b1_ref[...]          # (16, 1) -> broadcasts over the lane (batch) axis
    w2 = w2_ref[...]
    b2 = b2_ref[...]          # (2, 1)

    n_chunks = x_ref.shape[0] // _CHUNK   # static trip count

    def body(c, carry):
        start = pl.multiple_of(c * _CHUNK, _CHUNK)
        xc = x_ref[pl.ds(start, _CHUNK), :]                       # (CHUNK, 4)
        # Layer 1: W1 @ xc^T -- contraction over the feature axis of both
        # operands (NT matmul); the transpose is folded into the MXU op.
        h = lax.dot_general(w1, xc, (((1,), (1,)), ((), ())),
                            preferred_element_type=jnp.float32)   # (16, CHUNK)
        h = jnp.maximum(h + b1, 0.0)                              # ReLU on the VPU
        y = jnp.dot(w2, h, preferred_element_type=jnp.float32) + b2  # (2, CHUNK)
        o_ref[:, pl.ds(start, _CHUNK)] = y.astype(o_ref.dtype)    # lane-dense store
        return carry

    lax.fori_loop(0, n_chunks, body, 0)


def pack_params(w1, b1, w2, b2):
    """One-time parameter packing (hoisted out of the forward path):
    cast to f32 and reshape biases to column vectors that broadcast over the
    lane (batch) axis inside the kernel.  Call once per weight update."""
    return (jnp.asarray(w1, jnp.float32),                 # (16, 4)
            jnp.asarray(b1, jnp.float32).reshape(16, 1),  # (16, 1)
            jnp.asarray(w2, jnp.float32),                 # (2, 16)
            jnp.asarray(b2, jnp.float32).reshape(2, 1))   # (2, 1)


def dqn_qvalues_t(x, params, *, max_block_b=8192):
    """Q-values in the kernel's native (2, B) lane-dense layout.

    x: (B, 4) f32 states (PyTorch (N, in_features) convention).
    params: output of pack_params().
    Consumers such as greedy action selection should use argmax over axis 0
    on this result directly instead of transposing.
    """
    w1, b1, w2, b2 = params
    B = x.shape[0]

    # Batch tile: aim for >= 2 grid steps when B is large (v7x has 2 TCs and
    # the "parallel" axis only shards with >= 2 steps), multiple of the
    # in-kernel chunk, capped so the double-buffered (bt, 4) VMEM block stays
    # small (bt=8192 -> 2 x 4 MiB).
    bt = max(_CHUNK, min(max_block_b, _round_up(pl.cdiv(B, 2), 128)))
    bt = _round_up(bt, _CHUNK)
    b_pad = _round_up(B, bt)

    x = x.astype(jnp.float32)
    if b_pad != B:
        # Tail pad only (no transpose, no full-array round trip when B % bt == 0).
        x = jnp.pad(x, ((0, b_pad - B), (0, 0)))

    y = pl.pallas_call(
        dqn_kernel,
        out_shape=jax.ShapeDtypeStruct((2, b_pad), jnp.float32),
        grid=(b_pad // bt,),
        in_specs=[
            pl.BlockSpec((bt, 4), lambda i: (i, 0)),    # batch tiles stream through
            pl.BlockSpec((16, 4), lambda i: (0, 0)),    # weights / biases stay
            pl.BlockSpec((16, 1), lambda i: (0, 0)),    # VMEM-resident across steps
            pl.BlockSpec((2, 16), lambda i: (0, 0)),
            pl.BlockSpec((2, 1), lambda i: (0, 0)),
        ],
        out_specs=pl.BlockSpec((2, bt), lambda i: (0, i)),
        compiler_params=pltpu.CompilerParams(
            dimension_semantics=("parallel",),          # shard batch tiles across TCs
            vmem_limit_bytes=32 * 1024 * 1024,          # explicit: safe on v5e/v6e/v7x
        ),
    )(x, w1, b1, w2, b2)

    return y[:, :B]


def dqn_forward(x, params, **kwargs):
    """PyTorch-module-shaped output (B, 2).  The transpose is wrapper-side
    plumbing; latency-sensitive callers should consume dqn_qvalues_t()."""
    return dqn_qvalues_t(x, params, **kwargs).T


def init_params(key):
    """Deterministic synthetic init matching the PyTorch module's shapes.
    Weights ~ N(0, 0.1) as in the module; biases use a small uniform init."""
    k1, k2, k3, k4 = jax.random.split(key, 4)
    w1 = 0.1 * jax.random.normal(k1, (16, 4), dtype=jnp.float32)   # fc1.weight
    b1 = 0.05 * jax.random.uniform(k2, (16,), dtype=jnp.float32,
                                   minval=-1.0, maxval=1.0)        # fc1.bias
    w2 = 0.1 * jax.random.normal(k3, (2, 16), dtype=jnp.float32)   # fc2.weight
    b2 = 0.05 * jax.random.uniform(k4, (2,), dtype=jnp.float32,
                                   minval=-1.0, maxval=1.0)        # fc2.bias
    return w1, b1, w2, b2


if __name__ == "__main__":
    key = jax.random.PRNGKey(0)
    kx, kp = jax.random.split(key)
    w1, b1, w2, b2 = init_params(kp)
    params = pack_params(w1, b1, w2, b2)   # hoisted: once per weight update

    def ref_fwd(x):
        return jnp.maximum(x @ w1.T + b1, 0.0) @ w2.T + b2

    # Small per-step batch (exercises tail padding to one 256-sample chunk).
    B_small = 8
    x_small = jax.random.normal(kx, (B_small, 4), dtype=jnp.float32)
    out_small = jax.block_until_ready(dqn_forward(x_small, params))
    assert out_small.shape == (B_small, 2)
    assert jnp.allclose(out_small, ref_fwd(x_small), atol=1e-5, rtol=1e-5)

    # Larger replay-style batch (exercises the 2-step parallel grid + the
    # in-kernel chunk loop + tail padding).
    B_big = 1000
    x_big = jax.random.normal(jax.random.PRNGKey(1), (B_big, 4), dtype=jnp.float32)
    out_big = jax.block_until_ready(dqn_forward(x_big, params))
    assert out_big.shape == (B_big, 2)
    assert jnp.allclose(out_big, ref_fwd(x_big), atol=1e-5, rtol=1e-5)

    print("KERNEL_OK")
</pallas_src>

<mosaic_0001>
module attributes {stable_mosaic.version = 11 : i64} {
  func.func @dqn_kernel(%arg0: i32, %arg1: memref<256x4xf32, #tpu.memory_space<vmem>>, %arg2: memref<16x4xf32, #tpu.memory_space<vmem>>, %arg3: memref<16x1xf32, #tpu.memory_space<vmem>>, %arg4: memref<2x16xf32, #tpu.memory_space<vmem>>, %arg5: memref<2x1xf32, #tpu.memory_space<vmem>>, %arg6: memref<2x256xf32, #tpu.memory_space<vmem>>) attributes {dimension_semantics = [#tpu.dimension_semantics<parallel>], iteration_bounds = array<i64: 1>, scalar_prefetch = 0 : i64, scratch_operands = 0 : i64, tpu.core_type = #tpu.core_type<tc>, window_params = [{transform_indices = @transform_0, window_bounds = array<i64: 256, 4>}, {pipeline_mode = #tpu.pipeline_mode<synchronous>, transform_indices = @transform_1, window_bounds = array<i64: 16, 4>}, {pipeline_mode = #tpu.pipeline_mode<synchronous>, transform_indices = @transform_2, window_bounds = array<i64: 16, 1>}, {pipeline_mode = #tpu.pipeline_mode<synchronous>, transform_indices = @transform_3, window_bounds = array<i64: 2, 16>}, {pipeline_mode = #tpu.pipeline_mode<synchronous>, transform_indices = @transform_4, window_bounds = array<i64: 2, 1>}, {transform_indices = @transform_5, window_bounds = array<i64: 2, 256>}]} {
    %c0 = arith.constant 0 : index
    %c0_0 = arith.constant 0 : index
    %0 = vector.load %arg2[%c0, %c0_0] : memref<16x4xf32, #tpu.memory_space<vmem>>, vector<16x4xf32>
    %c0_1 = arith.constant 0 : index
    %c0_2 = arith.constant 0 : index
    %1 = vector.load %arg3[%c0_1, %c0_2] : memref<16x1xf32, #tpu.memory_space<vmem>>, vector<16x1xf32>
    %c0_3 = arith.constant 0 : index
    %c0_4 = arith.constant 0 : index
    %2 = vector.load %arg4[%c0_3, %c0_4] : memref<2x16xf32, #tpu.memory_space<vmem>>, vector<2x16xf32>
    %c0_5 = arith.constant 0 : index
    %c0_6 = arith.constant 0 : index
    %3 = vector.load %arg5[%c0_5, %c0_6] : memref<2x1xf32, #tpu.memory_space<vmem>>, vector<2x1xf32>
    %c0_i32 = arith.constant 0 : i32
    %c256_i32 = arith.constant 256 : i32
    %4 = arith.muli %c0_i32, %c256_i32 : i32
    %5 = tpu.assume_multiple %4, 256 : i32
    %6 = arith.index_cast %5 : i32 to index
    %c0_7 = arith.constant 0 : index
    %7 = vector.load %arg1[%6, %c0_7] : memref<256x4xf32, #tpu.memory_space<vmem>>, vector<256x4xf32>
    %cst = arith.constant dense<0.000000e+00> : vector<16x256xf32>
    %8 = tpu.matmul %0, %7, %cst {dimension_numbers = #tpu.dot_dimension_numbers<[1], [1], [0], [0], [0, 0, 1, 0], [], []>} : vector<16x4xf32>, vector<256x4xf32>, vector<16x256xf32> -> vector<16x256xf32>
    %9 = vector.broadcast %1 : vector<16x1xf32> to vector<16x256xf32>
    %10 = arith.addf %8, %9 : vector<16x256xf32>
    %cst_8 = arith.constant 0.000000e+00 : f32
    %11 = vector.broadcast %cst_8 : f32 to vector<16x256xf32>
    %12 = arith.maximumf %10, %11 : vector<16x256xf32>
    %cst_9 = arith.constant dense<0.000000e+00> : vector<2x256xf32>
    %13 = tpu.matmul %2, %12, %cst_9 {dimension_numbers = #tpu.dot_dimension_numbers<[1], [0], [0], [1], [0, 0, 1, 1], [], []>} : vector<2x16xf32>, vector<16x256xf32>, vector<2x256xf32> -> vector<2x256xf32>
    %14 = vector.broadcast %3 : vector<2x1xf32> to vector<2x256xf32>
    %15 = arith.addf %13, %14 : vector<2x256xf32>
    %c0_10 = arith.constant 0 : index
    %16 = arith.index_cast %5 : i32 to index
    %17 = vector.load %arg6[%c0_10, %16] : memref<2x256xf32, #tpu.memory_space<vmem>>, vector<2x256xf32>
    tpu.vector_store %arg6[%c0_10, %16], %15 {strides = array<i32>} : memref<2x256xf32, #tpu.memory_space<vmem>>, vector<2x256xf32>,
    %c1_i32 = arith.constant 1 : i32
    return
  }
  func.func @transform_0(%arg0: i32) -> (i32, i32) {
    %c0_i32 = arith.constant 0 : i32
    %c0_i32_0 = arith.constant 0 : i32
    return %arg0, %c0_i32 : i32, i32
  }
  func.func @transform_1(%arg0: i32) -> (i32, i32) {
    %c0_i32 = arith.constant 0 : i32
    %c0_i32_0 = arith.constant 0 : i32
    %c0_i32_1 = arith.constant 0 : i32
    return %c0_i32, %c0_i32_0 : i32, i32
  }
  func.func @transform_2(%arg0: i32) -> (i32, i32) {
    %c0_i32 = arith.constant 0 : i32
    %c0_i32_0 = arith.constant 0 : i32
    %c0_i32_1 = arith.constant 0 : i32
    return %c0_i32, %c0_i32_0 : i32, i32
  }
  func.func @transform_3(%arg0: i32) -> (i32, i32) {
    %c0_i32 = arith.constant 0 : i32
    %c0_i32_0 = arith.constant 0 : i32
    %c0_i32_1 = arith.constant 0 : i32
    return %c0_i32, %c0_i32_0 : i32, i32
  }
  func.func @transform_4(%arg0: i32) -> (i32, i32) {
    %c0_i32 = arith.constant 0 : i32
    %c0_i32_0 = arith.constant 0 : i32
    %c0_i32_1 = arith.constant 0 : i32
    return %c0_i32, %c0_i32_0 : i32, i32
  }
  func.func @transform_5(%arg0: i32) -> (i32, i32) {
    %c0_i32 = arith.constant 0 : i32
    %c0_i32_0 = arith.constant 0 : i32
    return %c0_i32, %arg0 : i32, i32
  }
}

</mosaic_0001>

<bundles_post_ra>
// kernel: tpu_custom_call.1
= control target key start
LH: loop header
LB: loop body
LE: loop exit
PB: predicated region body
PF: predicated region fallthrough
CT: control target
= control target key end

     0   :  { %vm69_vm0 = vcmask 31744   ;;  %v512_v7 = vmov 0   ;;  %s713_s0 = inlined_call_operand.vmem [shape: f32[256,4], index: 0, kind: input, shape index: {}]   ;;  %s714_s1 = inlined_call_operand.vmem [shape: f32[16,4], index: 1, kind: input, shape index: {}]   ;;  %s715_s2 = inlined_call_operand.vmem [shape: f32[16,1], index: 2, kind: input, shape index: {}]   ;;  %s716_s3 = inlined_call_operand.vmem [shape: f32[2,16], index: 3, kind: input, shape index: {}]   ;;  %s717_s4 = inlined_call_operand.vmem [shape: f32[2,1], index: 4, kind: input, shape index: {}]   ;;  %s718_s5 = inlined_call_operand.hbm [shape: f32[2,256], index: 5, kind: output, shape index: {}]  }
   0x1   :  { %v43_v0 = vld [vmem:[%s713_s0 + $0x80] sm:$0xff]  ;;  %v44_v1 = vld [vmem:[%s713_s0 + $0x88] sm:$0xff]  ;;  %vm556_vm1 = vmpackc.low %vm69_vm0, %vm69_vm0  ;;  %486 = vset.pattern.permute.xlu0 %v512_v7  ;;  %487 = vset.pattern.permute.xlu1 %v512_v7 }
   0x2   :  { %v27_v2 = vld [vmem:[%s713_s0] sm:$0xff]  ;;  %v431_v3 = vpack.c.bf16 %v44_v1, %v43_v0  ;;  %v28_v5 = vld [vmem:[%s713_s0 + $0x8] sm:$0xff]  ;;  %v45_v6 = vld [vmem:[%s713_s0 + $0x90] sm:$0xff] }
   0x3   :  { %v434_v8 = vpack.c.bf16 %v28_v5, %v27_v2  ;;  %v46_v9 = vld [vmem:[%s713_s0 + $0x98] sm:$0xff]  ;;  %v29_v11 = vld [vmem:[%s713_s0 + $0x10] sm:$0xff]  ;;  %v47_v13 = vld [vmem:[%s713_s0 + $0xa0] sm:$0xff] }
   0x4   :  { %433 = vmatprep.subr.msk.bf16.mxu0 %vm556_vm1, %v431_v3  ;;  %v437_v10 = vpack.c.bf16 %v46_v9, %v45_v6  ;;  %v30_v12 = vld [vmem:[%s713_s0 + $0x18] sm:$0xff]  ;;  %v48_v14 = vld [vmem:[%s713_s0 + $0xa8] sm:$0xff]  ;;  %v21_v17 = vld [vmem:[%s714_s1] sm:$0xff] }
   0x5   :  { %436 = vmatpush3.bf16.xpose.msk.msra.mxu0 %vm556_vm1, %v434_v8  ;;  %v440_v15 = vpack.c.bf16 %v30_v12, %v29_v11  ;;  %v443_v16 = vpack.c.bf16 %v48_v14, %v47_v13  ;;  %v23_v18 = vld [vmem:[%s715_s2] sm:$0xff]  ;;  %427 = vmatprep.mubr.msk.f32.mxu0 %vm69_vm0, %v21_v17 }
   0x6   :  { %439 = vmatprep.subr.msk.bf16.mxu0 %vm556_vm1, %v437_v10 }
   0xd   :  { %442 = vmatpush3.bf16.xpose.msk.msra.mxu0 %vm556_vm1, %v440_v15 }
   0xe   :  { %10 = vsyncpa [#allocation3], 0  ;;  %445 = vmatprep.subr.msk.bf16.mxu0 %vm556_vm1, %v443_v16  ;;  %v31_v19 = vld [vmem:[%s713_s0 + $0x20] sm:$0xff]  ;;  %v32_v20 = vld [vmem:[%s713_s0 + $0x28] sm:$0xff]  ;;  %61 = vperm.xlu0 %486, %v23_v18   ;;  %v513_v54 = vmov 0.0   ;;  %vm258_vm2 = vcmask 130048  }
   0xf   :  { %v49_v21 = vld [vmem:[%s713_s0 + $0xb0] sm:$0xff]  ;;  %v50_v22 = vld [vmem:[%s713_s0 + $0xb8] sm:$0xff]  ;;  %v24_v23 = vld [vmem:[%s715_s2 + $0x8] sm:$0xff]  ;;  %v446_v24 = vpack.c.bf16 %v32_v20, %v31_v19  ;;  %326 = vmatprep.mubr.f32.mxu1 %v513_v54 }
  0x10   :  { %v449_v25 = vpack.c.bf16 %v50_v22, %v49_v21  ;;  %v33_v26 = vld [vmem:[%s713_s0 + $0x30] sm:$0xff]  ;;  %v34_v27 = vld [vmem:[%s713_s0 + $0x38] sm:$0xff]  ;;  %v51_v28 = vld [vmem:[%s713_s0 + $0xc0] sm:$0xff] }
  0x11   :  { %v52_v29 = vld [vmem:[%s713_s0 + $0xc8] sm:$0xff]  ;;  %v452_v30 = vpack.c.bf16 %v34_v27, %v33_v26  ;;  %v35_v32 = vld [vmem:[%s713_s0 + $0x40] sm:$0xff]  ;;  %v53_v34 = vld [vmem:[%s713_s0 + $0xd0] sm:$0xff] }
  0x12   :  { %66 = vperm.xlu0 %486, %v24_v23   ;;  %v455_v31 = vpack.c.bf16 %v52_v29, %v51_v28  ;;  %v36_v33 = vld [vmem:[%s713_s0 + $0x48] sm:$0xff]  ;;  %v54_v35 = vld [vmem:[%s713_s0 + $0xd8] sm:$0xff]  ;;  %v37_v38 = vld [vmem:[%s713_s0 + $0x50] sm:$0xff] }
  0x13   :  { %v458_v36 = vpack.c.bf16 %v36_v33, %v35_v32  ;;  %v461_v37 = vpack.c.bf16 %v54_v35, %v53_v34  ;;  %v38_v39 = vld [vmem:[%s713_s0 + $0x58] sm:$0xff]  ;;  %v55_v40 = vld [vmem:[%s713_s0 + $0xe0] sm:$0xff]  ;;  %v56_v41 = vld [vmem:[%s713_s0 + $0xe8] sm:$0xff] }
  0x14   :  { %v464_v42 = vpack.c.bf16 %v38_v39, %v37_v38  ;;  %v467_v43 = vpack.c.bf16 %v56_v41, %v55_v40  ;;  %v39_v44 = vld [vmem:[%s713_s0 + $0x60] sm:$0xff]  ;;  %v40_v45 = vld [vmem:[%s713_s0 + $0x68] sm:$0xff]  ;;  %v57_v46 = vld [vmem:[%s713_s0 + $0xf0] sm:$0xff] }
  0x15   :  { %448 = vmatpush3.bf16.xpose.msk.msra.mxu0 %vm556_vm1, %v446_v24  ;;  %v58_v47 = vld [vmem:[%s713_s0 + $0xf8] sm:$0xff]  ;;  %v470_v48 = vpack.c.bf16 %v40_v45, %v39_v44  ;;  %v41_v50 = vld [vmem:[%s713_s0 + $0x70] sm:$0xff]  ;;  %v22_v53 = vld [vmem:[%s714_s1 + $0x8] sm:$0xff] }
  0x16   :  { %451 = vmatprep.subr.msk.bf16.mxu0 %vm556_vm1, %v449_v25  ;;  %v473_v49 = vpack.c.bf16 %v58_v47, %v57_v46  ;;  %v42_v51 = vld [vmem:[%s713_s0 + $0x78] sm:$0xff]  ;;  %v26_v55 = vld [vmem:[%s717_s4] sm:$0x3]  ;;  %s514_s4 = smov [#allocation2]  }
  0x17   :  { %v476_v52 = vpack.c.bf16 %v42_v51, %v41_v50  ;;  %255 = vperm.xlu1 %487, %v26_v55   ;;  %v25_v8 = vld [vmem:[%s716_s3] sm:$0x3]  ;;  %s351_s15 = sshll.u32 %s514_s4, 4  ;;  %s352_s15 = int_to_ptr.vmem [resolvable:$true] %s351_s15 }
  0x18   :  { %s488_s16 = scalar_lea.vmem %s352_s15, 64  ;;  %p493_p1 = scmp.lt.s32.totalorder %s352_s15, %s352_s15 }
  0x19   :  { %p489_p0 = scmp.ne.s32.totalorder %s352_s15, %s488_s16  ;;  %p494_p2 = scmp.lt.s32.totalorder %s488_s16, %s488_s16 }
  0x1b   :  { %p495_p3 = por %p494_p2, %p493_p1 }
  0x1d   :  { %454 = vmatpush3.bf16.xpose.msk.msra.mxu0 %vm556_vm1, %v452_v30  ;;  %p496_p4 = pnand %p495_p3, %p489_p0 }
  0x1e   :  { %457 = vmatprep.subr.msk.bf16.mxu0 %vm556_vm1, %v455_v31 }
  0x25   :  { %460 = vmatpush3.bf16.xpose.msk.msra.mxu0 %vm556_vm1, %v458_v36 }
  0x26   :  { %463 = vmatprep.subr.msk.bf16.mxu0 %vm556_vm1, %v461_v37 }
  0x2d   :  { %466 = vmatpush3.bf16.xpose.msk.msra.mxu0 %vm556_vm1, %v464_v42 }
  0x2e   :  { %469 = vmatprep.subr.msk.bf16.mxu0 %vm556_vm1, %v467_v43 }
  0x35   :  { %472 = vmatpush3.bf16.xpose.msk.msra.mxu0 %vm556_vm1, %v470_v48 }
  0x36   :  { %475 = vmatprep.subr.msk.bf16.mxu0 %vm556_vm1, %v473_v49 }
  0x3d   :  { %478 = vmatpush3.bf16.xpose.msk.msra.mxu0 %vm556_vm1, %v476_v52 }
  0x44   :  { %428 = vmatmul.mubr.msk.f32.vlgmr.msra.gmra.mrb[0].mxu0 %vm69_vm0, %v21_v17 }
  0x45   :  { %429 = vmatprep.mubr.msk.f32.mxu0 %vm69_vm0, %v22_v53 }
  0x48   :  { %430 = vmatmul.mubr.msk.f32.gmra.mrb[2].mxu0 %vm69_vm0, %v22_v53 }
  0x8d   :  { %v62_v56 = vpop.permute.xlu0 %61 }
  0x91   :  { %v67_v60 = vpop.permute.xlu0 %66 }
  0x96   :  { %v256_v9 = vpop.permute.xlu1 %255 }
 0x117   :  { %v238_v57 = vpop.f32.mrb[0].mxu0 }
 0x118   :  { %v240_v58 = vpop.f32.mrb[1].mxu0  ;;  %v239_v59 = vadd.f32 %v238_v57, %v62_v56 }
 0x119   :  { %v241_v61 = vadd.f32 %v240_v58, %v62_v56 }
 0x11a   :  { %v249_v2 = vmax.f32 %v239_v59, 0.0 }
 0x11b   :  { %v244_v62 = vpop.f32.mrb[2].mxu0  ;;  %v250_v4 = vmax.f32 %v241_v61, 0.0 }
 0x11c   :  { %v245_v63 = vadd.f32 %v244_v62, %v67_v60  ;;  %v246_v0 = vpop.f32.mrb[3].mxu0 }
 0x11d   :  { %v247_v1 = vadd.f32 %v246_v0, %v67_v60 }
 0x11e   :  { %v251_v3 = vmax.f32 %v245_v63, 0.0 }
 0x11f   :  { %v252_v5 = vmax.f32 %v247_v1, 0.0 }
 0x120   :  { %v481_v6 = vpack.c.bf16 %v251_v3, %v249_v2 }
 0x121   :  { %v479_v7 = vpack.c.bf16 %v252_v5, %v250_v4 }
 0x123   :  { %480 = vmatprep.subr.bf16.mxu1 %v479_v7 }
 0x124   :  { %482 = vmatpush1.bf16.msra.mxu1 %v481_v6 }
 0x127   :  { %393 = vmatmul.mubr.msk.f32.vlgmr.msra.gmra.mrb[0].mxu1 %vm258_vm2, %v25_v8 }
 0x1fa   :  { %v328_v10 = vpop.f32.mrb[0].mxu1 }
 0x1fb   :  { %v329_v11 = vadd.f32 %v328_v10, %v256_v9  ;;  %v330_v12 = vpop.f32.mrb[1].mxu1 }
 0x1fc   :  { %v331_v13 = vadd.f32 %v330_v12, %v256_v9 }
 0x1fe   :  { %v335_v14 = vcombine.low %v329_v11, %v331_v13 }
 0x200   :  { %394 = vst.sshfl [vmem:[#allocation2] sm:$0x33 pattern:$0x76325410] %v335_v14 }
 0x201   :  { %499 = shalt.err (!%p496_p4)
}
 0x202   :  { %s500_s18 = scalar_lea.hbm %s718_s5, 64 }
 0x203   :  { %p501_p5 = scmp.ne.s32.totalorder %s718_s5, %s500_s18  ;;  %p504_p6 = scmp.lt.u32.totalorder %s500_s18, %s718_s5 }
 0x205   :  { %p506_p7 = pnand %p504_p6, %p501_p5 }
 0x207   :  { %509 = shalt.err (!%p506_p7)
}
 0x208   :  { %354 = dma.vmem_to_hbm [thread:$0]  %s352_s15, 64, %s718_s5, [#allocation3]  }
 0x209   :  { %510 = dma.done.wait [#allocation3], 64  }
 0x20a   :  { %511 = vsyncadd [#allocation3], 4294967232 }
 0x20b   :  { %358 = vsyncpa [#allocation3], 1 }

</bundles_post_ra>
